<compile_context>
chip_gen: v7x
topology: tpu7x:2x2x1
jax: 0.10.0
libtpu: 0.0.40
codegen_flags: <defaults>
</compile_context>

<pallas_src>
import functools

import numpy as np
import jax
import jax.numpy as jnp
from jax.experimental import pallas as pl
from jax.experimental.pallas import tpu as pltpu


# ---------------------------------------------------------------------------
# Pallas kernel: tiled matmul  o[i, j] = sum_k x[i, k] * w[k, j]
# f32 accumulation in VMEM scratch, init/finalize gated on the K grid axis.
# ---------------------------------------------------------------------------
def _matmul_kernel(x_ref, w_ref, o_ref, acc_ref, *, precision):
    @pl.when(pl.program_id(2) == 0)
    def _init():
        acc_ref[...] = jnp.zeros_like(acc_ref)

    acc_ref[...] += jnp.dot(
        x_ref[...],
        w_ref[...],
        preferred_element_type=jnp.float32,
        precision=precision,
    )

    @pl.when(pl.program_id(2) == pl.num_programs(2) - 1)
    def _finalize():
        o_ref[...] = acc_ref[...].astype(o_ref.dtype)


# ---------------------------------------------------------------------------
# Tile selection helpers.
# ---------------------------------------------------------------------------
def _pick_row_tile(m, target):
    """Multiple of 8 (or full M).  For M > 16, cap at round_down(M/2, 8) so the
    row grid has >= 2 steps and both v7x TensorCores get work."""
    if m <= 16:
        return m
    cap = max(8, ((m // 2) // 8) * 8)
    tgt = max(8, (target // 8) * 8)
    return min(tgt, cap)


def _pick_lane_tile(n, target):
    """N-style dim (lanes of w/out): multiple of 128 or the full dim.
    Ragged padding here is harmless (output padding is never written back)."""
    if n <= target:
        return n
    return max(128, (target // 128) * 128)


def _pick_reduction_tile(k, target):
    """K (contraction) tiles must evenly divide K: Pallas pads ragged input
    blocks with undefined data, which would pollute the accumulator."""
    if k <= target:
        return k
    t = max(128, (target // 128) * 128)
    while t >= 128:
        if k % t == 0:
            return t
        t -= 128
    return k  # no 128-aligned divisor -> single full-K block (always correct)


# ---------------------------------------------------------------------------
# Pallas-call wrapper: y = x2 @ w_t with (M, N, K) grid.
# ---------------------------------------------------------------------------
def _pallas_matmul(x2, w_t, *, out_dtype=None, row_tile=512, col_tile=512,
                   k_tile=512, precision=None):
    m, k = x2.shape
    kw, n = w_t.shape
    assert k == kw, (x2.shape, w_t.shape)
    out_dtype = jnp.dtype(out_dtype or x2.dtype)

    if x2.dtype != w_t.dtype:          # e.g. bf16 weights on v6e/v7x
        x2 = x2.astype(w_t.dtype)

    tm = _pick_row_tile(m, row_tile)
    tn = _pick_lane_tile(n, col_tile)
    tk = _pick_reduction_tile(k, k_tile)
    grid = (pl.cdiv(m, tm), pl.cdiv(n, tn), pl.cdiv(k, tk))

    x_bytes = jnp.dtype(x2.dtype).itemsize
    w_bytes = jnp.dtype(w_t.dtype).itemsize
    o_bytes = out_dtype.itemsize

    # Double-buffered x / w / out tiles + f32 accumulator.
    vmem_need = (2 * tm * tk * x_bytes + 2 * tk * tn * w_bytes
                 + 2 * tm * tn * o_bytes + tm * tn * 4)
    vmem_limit = int(min(64 << 20, max(2 * vmem_need, 32 << 20)))

    cost = pl.CostEstimate(
        flops=2 * m * n * k,
        transcendentals=0,
        bytes_accessed=m * k * x_bytes + k * n * w_bytes + m * n * o_bytes,
    )

    kernel = functools.partial(_matmul_kernel, precision=precision)
    return pl.pallas_call(
        kernel,
        out_shape=jax.ShapeDtypeStruct((m, n), out_dtype),
        grid_spec=pltpu.PrefetchScalarGridSpec(
            num_scalar_prefetch=0,
            grid=grid,
            in_specs=[
                pl.BlockSpec((tm, tk), lambda i, j, kk: (i, kk)),
                pl.BlockSpec((tk, tn), lambda i, j, kk: (kk, j)),
            ],
            out_specs=pl.BlockSpec((tm, tn), lambda i, j, kk: (i, j)),
            scratch_shapes=[pltpu.VMEM((tm, tn), jnp.float32)],
        ),
        compiler_params=pltpu.CompilerParams(
            dimension_semantics=("parallel", "parallel", "arbitrary"),
            vmem_limit_bytes=vmem_limit,
        ),
        cost_estimate=cost,
    )(x2, w_t)


# ---------------------------------------------------------------------------
# Weight precompute (run once per parameter update, NOT per forward call).
# ---------------------------------------------------------------------------
def precompute_circulant_weight(eigens, *, interleave=False, dtype=None):
    """eigens (q, p, k) -> W.T ready for `x @ W.T`.

    W[Q*k+n, P*k+j] = eigens[Q, P, (n - j) mod k]  (block-circulant: the FFT
    pipeline of the PyTorch module folded analytically).
    Returns (in, out), or W.T (x) I2 of shape (2*in, 2*out) when interleave=True
    so the matmul can consume x with re/im interleaved on the lane axis
    (only worthwhile for very narrow channels).  Pass dtype=jnp.bfloat16 on
    v6e/v7x to halve weight VMEM/HBM traffic.
    """
    q, p, k = eigens.shape
    n = jnp.arange(k)
    circ = (n[:, None] - n[None, :]) % k                        # (k, k): (n - j) mod k
    blocks = eigens[:, :, circ]                                 # (q, p, k, k)
    w = jnp.transpose(blocks, (0, 2, 1, 3)).reshape(q * k, p * k)   # (out, in)
    w_t = w.T                                                   # (in, out)
    if interleave:
        eye2 = jnp.eye(2, dtype=w_t.dtype)
        w_t = (w_t[:, None, :, None] * eye2[None, :, None, :]
               ).reshape(2 * p * k, 2 * q * k)                  # (2*in, 2*out)
    if dtype is not None:
        w_t = w_t.astype(dtype)
    return w_t


# ---------------------------------------------------------------------------
# CirculantLinear_v6 forward.
# ---------------------------------------------------------------------------
def circulant_linear_forward(x, w_t, *, interleaved, precision=None,
                             row_tile=512, col_tile=512, k_tile=512):
    """x: (..., in_channel, 2) real tensor carrying (re, im).
    w_t: output of precompute_circulant_weight (hoist it out of the hot path).
    Returns (-1, out_channel, 2), matching the PyTorch module's output view."""
    # TODO(synk): phase_drift Gaussian phase-noise injection (module default False) is not implemented.
    if interleaved:
        in_channel, out_channel = w_t.shape[0] // 2, w_t.shape[1] // 2
    else:
        in_channel, out_channel = w_t.shape
    xf = x.reshape(-1, in_channel, 2)
    b = xf.shape[0]
    out_dtype = x.dtype

    if interleaved:
        # Pure view: lanes are [r0, i0, r1, i1, ...]; W.T (x) I2 keeps re/im
        # independent.  Best when 2*in_channel < 128 (K-lane fill).
        x2 = xf.reshape(b, 2 * in_channel)
        y2 = _pallas_matmul(x2, w_t, out_dtype=out_dtype, precision=precision,
                            row_tile=row_tile, col_tile=col_tile, k_tile=k_tile)
        return y2.reshape(-1, out_channel, 2)

    # De-interleave re/im into rows (one small wrapper transpose): halves the
    # matmul FLOPs and quarters the resident weight vs the (x) I2 layout.
    x2 = jnp.swapaxes(xf, -1, -2).reshape(2 * b, in_channel)
    y2 = _pallas_matmul(x2, w_t, out_dtype=out_dtype, precision=precision,
                        row_tile=row_tile, col_tile=col_tile, k_tile=k_tile)
    return jnp.swapaxes(y2.reshape(b, 2, out_channel), -1, -2)


def circulant_linear(x, eigens, *, precision=None, weight_dtype=None,
                     interleave=None, **tile_kwargs):
    """Convenience: weight prep + forward (prefer hoisting the prep yourself)."""
    q, p, k = eigens.shape
    if interleave is None:
        interleave = (2 * p * k) < 128      # tiny K: interleave improves lane fill
    w_t = precompute_circulant_weight(eigens, interleave=interleave,
                                      dtype=weight_dtype or x.dtype)
    return circulant_linear_forward(x, w_t, interleaved=interleave,
                                    precision=precision, **tile_kwargs)


# ---------------------------------------------------------------------------
# Pure-JAX reference mirroring the PyTorch forward (old torch.fft semantics).
# ---------------------------------------------------------------------------
def circulant_linear_ref(x, eigens):
    q, p, k = eigens.shape
    f_eigens = jnp.fft.fft(eigens.astype(jnp.complex64), axis=-1)   # rfft, onesided=False
    xc = x[..., 0] + 1j * x[..., 1]
    xc = xc.reshape(-1, p, k)
    f_x = jnp.fft.fft(xc, axis=-1) / np.sqrt(k)                     # fft, normalized=True
    f_mul = f_eigens[None, :, :, :] * f_x[:, None, :, :]            # complex_mult
    if_mul = jnp.fft.ifft(f_mul, axis=-1) * np.sqrt(k)              # ifft, normalized=True
    out = jnp.sum(if_mul, axis=2)                                   # sum over gridDim_x
    out = out.reshape(-1, q * k)
    return jnp.stack([out.real, out.imag], axis=-1)                 # (-1, out_channel, 2)


if __name__ == "__main__":
    key = jax.random.PRNGKey(0)
    k1, k2, k3, k4 = jax.random.split(key, 4)

    # ---- Config A: module-default tiny shapes (interleaved narrow-K path) ----
    in_ch, out_ch, mb, batch = 32, 32, 4, 8
    eigens_a = jax.random.normal(k1, (out_ch // mb, in_ch // mb, mb), jnp.float32)
    x_a = jax.random.normal(k2, (batch, in_ch, 2), jnp.float32)

    ilv_a = (2 * in_ch) < 128                      # True: keep re/im interleave
    w_a = precompute_circulant_weight(eigens_a, interleave=ilv_a)  # hoisted: once per param update
    ref_a = circulant_linear_ref(x_a, eigens_a)

    # Structural check at exact-f32 MXU precision (HIGHEST).
    y_a_exact = jax.block_until_ready(
        circulant_linear_forward(x_a, w_a, interleaved=ilv_a,
                                 precision=jax.lax.Precision.HIGHEST))
    assert y_a_exact.shape == (batch, out_ch, 2)
    np.testing.assert_allclose(np.asarray(y_a_exact), np.asarray(ref_a),
                               rtol=1e-4, atol=1e-4)

    # Perf configuration (DEFAULT = single bf16 MXU pass, f32 accumulation);
    # tolerance calibrated for bf16 operand truncation over the K=64 contraction.
    y_a = jax.block_until_ready(
        circulant_linear_forward(x_a, w_a, interleaved=ilv_a))
    assert y_a.shape == (batch, out_ch, 2)
    np.testing.assert_allclose(np.asarray(y_a), np.asarray(ref_a),
                               rtol=5e-2, atol=0.2)

    # ---- Config B: larger channels -> de-interleaved plain-W path, 2 row
    #      tiles, and N/K grid axes + VMEM accumulator (small tile targets) ----
    in_ch, out_ch, mb, batch = 256, 256, 8, 64
    eigens_b = jax.random.normal(k3, (out_ch // mb, in_ch // mb, mb), jnp.float32)
    x_b = jax.random.normal(k4, (batch, in_ch, 2), jnp.float32)

    w_b = precompute_circulant_weight(eigens_b, interleave=False)
    ref_b = circulant_linear_ref(x_b, eigens_b)

    y_b_exact = jax.block_until_ready(
        circulant_linear_forward(x_b, w_b, interleaved=False,
                                 row_tile=64, col_tile=128, k_tile=128,
                                 precision=jax.lax.Precision.HIGHEST))
    assert y_b_exact.shape == (batch, out_ch, 2)
    np.testing.assert_allclose(np.asarray(y_b_exact), np.asarray(ref_b),
                               rtol=1e-4, atol=1e-4)

    y_b = jax.block_until_ready(
        circulant_linear_forward(x_b, w_b, interleaved=False,
                                 row_tile=64, col_tile=128, k_tile=128))
    np.testing.assert_allclose(np.asarray(y_b), np.asarray(ref_b),
                               rtol=5e-2, atol=0.4)

    print("KERNEL_OK")
</pallas_src>

<mosaic_0001>
module attributes {stable_mosaic.version = 11 : i64} {
  func.func @_matmul_kernel(%arg0: i32, %arg1: i32, %arg2: i32, %arg3: memref<8x64xf32, #tpu.memory_space<vmem>>, %arg4: memref<64x64xf32, #tpu.memory_space<vmem>>, %arg5: memref<8x64xf32, #tpu.memory_space<vmem>>, %arg6: memref<8x64xf32, #tpu.memory_space<vmem>>) attributes {dimension_semantics = [#tpu.dimension_semantics<parallel>, #tpu.dimension_semantics<parallel>, #tpu.dimension_semantics<arbitrary>], iteration_bounds = array<i64: 1, 1, 1>, scalar_prefetch = 0 : i64, scratch_operands = 1 : i64, tpu.core_type = #tpu.core_type<tc>, window_params = [{transform_indices = @transform_0, window_bounds = array<i64: 8, 64>}, {transform_indices = @transform_1, window_bounds = array<i64: 64, 64>}, {transform_indices = @transform_2, window_bounds = array<i64: 8, 64>}]} {
    %c0_i32 = arith.constant 0 : i32
    %0 = arith.cmpi eq, %arg2, %c0_i32 : i32
    %1 = arith.extui %0 : i1 to i32
    %c0_i32_0 = arith.constant 0 : i32
    %2 = arith.cmpi ne, %1, %c0_i32_0 : i32
    scf.if %2 {
      %cst_10 = arith.constant 0.000000e+00 : f32
      %12 = vector.broadcast %cst_10 : f32 to vector<8x64xf32>
      %c0_11 = arith.constant 0 : index
      %c0_12 = arith.constant 0 : index
      %13 = vector.load %arg6[%c0_11, %c0_12] : memref<8x64xf32, #tpu.memory_space<vmem>>, vector<8x64xf32>
      tpu.vector_store %arg6[%c0_11, %c0_12], %12 {strides = array<i32>} : memref<8x64xf32, #tpu.memory_space<vmem>>, vector<8x64xf32>,
    } else {
    }
    %c0 = arith.constant 0 : index
    %c0_1 = arith.constant 0 : index
    %3 = vector.load %arg6[%c0, %c0_1] : memref<8x64xf32, #tpu.memory_space<vmem>>, vector<8x64xf32>
    %c0_2 = arith.constant 0 : index
    %c0_3 = arith.constant 0 : index
    %4 = vector.load %arg3[%c0_2, %c0_3] : memref<8x64xf32, #tpu.memory_space<vmem>>, vector<8x64xf32>
    %c0_4 = arith.constant 0 : index
    %c0_5 = arith.constant 0 : index
    %5 = vector.load %arg4[%c0_4, %c0_5] : memref<64x64xf32, #tpu.memory_space<vmem>>, vector<64x64xf32>
    %cst = arith.constant dense<0.000000e+00> : vector<8x64xf32>
    %6 = tpu.matmul %4, %5, %cst {dimension_numbers = #tpu.dot_dimension_numbers<[1], [0], [0], [1], [0, 0, 1, 1], [], []>, precision = #tpu.contract_precision<fp32>} : vector<8x64xf32>, vector<64x64xf32>, vector<8x64xf32> -> vector<8x64xf32>
    %7 = arith.addf %3, %6 : vector<8x64xf32>
    %c0_6 = arith.constant 0 : index
    %c0_7 = arith.constant 0 : index
    %8 = vector.load %arg6[%c0_6, %c0_7] : memref<8x64xf32, #tpu.memory_space<vmem>>, vector<8x64xf32>
    tpu.vector_store %arg6[%c0_6, %c0_7], %7 {strides = array<i32>} : memref<8x64xf32, #tpu.memory_space<vmem>>, vector<8x64xf32>,
    %c0_i32_8 = arith.constant 0 : i32
    %9 = arith.cmpi eq, %arg2, %c0_i32_8 : i32
    %10 = arith.extui %9 : i1 to i32
    %c0_i32_9 = arith.constant 0 : i32
    %11 = arith.cmpi ne, %10, %c0_i32_9 : i32
    scf.if %11 {
      %c0_10 = arith.constant 0 : index
      %c0_11 = arith.constant 0 : index
      %12 = vector.load %arg6[%c0_10, %c0_11] : memref<8x64xf32, #tpu.memory_space<vmem>>, vector<8x64xf32>
      %c0_12 = arith.constant 0 : index
      %c0_13 = arith.constant 0 : index
      %13 = vector.load %arg5[%c0_12, %c0_13] : memref<8x64xf32, #tpu.memory_space<vmem>>, vector<8x64xf32>
      tpu.vector_store %arg5[%c0_12, %c0_13], %12 {strides = array<i32>} : memref<8x64xf32, #tpu.memory_space<vmem>>, vector<8x64xf32>,
    } else {
    }
    return
  }
  func.func @transform_0(%arg0: i32, %arg1: i32, %arg2: i32) -> (i32, i32) {
    %c0_i32 = arith.constant 0 : i32
    return %arg0, %arg2 : i32, i32
  }
  func.func @transform_1(%arg0: i32, %arg1: i32, %arg2: i32) -> (i32, i32) {
    %c0_i32 = arith.constant 0 : i32
    return %arg2, %arg1 : i32, i32
  }
  func.func @transform_2(%arg0: i32, %arg1: i32, %arg2: i32) -> (i32, i32) {
    %c0_i32 = arith.constant 0 : i32
    return %arg0, %arg1 : i32, i32
  }
}

</mosaic_0001>

<bundles_post_ra>
// kernel: tpu_custom_call.1
= control target key start
LH: loop header
LB: loop body
LE: loop exit
PB: predicated region body
PF: predicated region fallthrough
CT: control target
= control target key end

     0   :  { %7 = vsyncpa [#allocation4], 0  ;;  %s1140_s0 = inlined_call_operand.hbm [shape: f32[8,64], index: 0, kind: input, shape index: {}]   ;;  %s1141_s1 = inlined_call_operand.hbm [shape: f32[64,64], index: 1, kind: input, shape index: {}]   ;;  %s1142_s2 = inlined_call_operand.hbm [shape: f32[8,64], index: 2, kind: output, shape index: {}]  }
   0x1   :  { %8 = vsyncpa [#allocation7], 0 }
   0x2   :  { %9 = vsyncpa [#allocation5], 0  ;;  %s938_s9 = smov [#allocation3]   ;;  %s939_s11 = smov [#allocation6]  }
   0x3   :  { %s16_s10 = sshll.u32 %s938_s9, 4  ;;  %s25_s12 = sshll.u32 %s939_s11, 4  ;;  %s17_s10 = int_to_ptr.vmem [resolvable:$true] %s16_s10  ;;  %s961_s12 = int_to_ptr.vmem [resolvable:$true] %s25_s12 }
   0x4   :  { %s866_s15 = scalar_lea.hbm %s1140_s0, 128 }
   0x5   :  { %p867_p0 = scmp.ne.s32.totalorder %s1140_s0, %s866_s15  ;;  %p870_p1 = scmp.lt.u32.totalorder %s866_s15, %s1140_s0 }
   0x7   :  { %p872_p2 = pnand %p870_p1, %p867_p0 }
   0x9   :  { %875 = shalt.err (!%p872_p2)
}
   0xa   :  { %s876_s20 = scalar_lea.vmem %s17_s10, 128  ;;  %p881_p4 = scmp.lt.s32.totalorder %s17_s10, %s17_s10 }
   0xb   :  { %p877_p3 = scmp.ne.s32.totalorder %s17_s10, %s876_s20  ;;  %p882_p5 = scmp.lt.s32.totalorder %s876_s20, %s876_s20 }
   0xd   :  { %p883_p6 = por %p882_p5, %p881_p4 }
   0xf   :  { %p884_p7 = pnand %p883_p6, %p877_p3 }
  0x11   :  { %887 = shalt.err (!%p884_p7)
}
  0x12   :  { %19 = dma.hbm_to_vmem [thread:$0]  %s1140_s0, 128, %s17_s10, [#allocation4]  }
  0x13   :  { %s888_s25 = scalar_lea.hbm %s1141_s1, 1024 }
  0x14   :  { %p889_p8 = scmp.ne.s32.totalorder %s1141_s1, %s888_s25  ;;  %p892_p9 = scmp.lt.u32.totalorder %s888_s25, %s1141_s1 }
  0x16   :  { %p894_p10 = pnand %p892_p9, %p889_p8 }
  0x18   :  { %897 = shalt.err (!%p894_p10)
}
  0x19   :  { %s898_s30 = scalar_lea.vmem %s961_s12, 1024  ;;  %p903_p12 = scmp.lt.s32.totalorder %s961_s12, %s961_s12 }
  0x1a   :  { %p899_p11 = scmp.ne.s32.totalorder %s961_s12, %s898_s30  ;;  %p904_p13 = scmp.lt.s32.totalorder %s898_s30, %s898_s30 }
  0x1c   :  { %p905_p0 = por %p904_p13, %p903_p12 }
  0x1e   :  { %p906_p1 = pnand %p905_p0, %p899_p11 }
  0x20   :  { %909 = shalt.err (!%p906_p1)
}
  0x21   :  { %s940_s0 = smov 128   ;;  %s941_s3 = smov 8  }
  0x22   :  { %31 = dma.hbm_to_vmem [thread:$0]  %s1141_s1, 1024, %s961_s12, [#allocation7], %s940_s0, %s940_s0, %s941_s3  }
  0x23   :  { %932 = dma.done.wait [#allocation4], 128  }
  0x24   :  { %933 = vsyncadd [#allocation4], 4294967168 }
  0x25   :  { %934 = dma.done.wait [#allocation7], 1024  }
  0x26   :  { %935 = vsyncadd [#allocation7], 4294966272  ;;  %vm42_vm0 = vcmask 523264   ;;  %v942_v0 = vmov 0.0|0.0   ;;  %v943_v1 = vmov 0.0   ;;  %vm944_vm1 = vmmov 0  }
  0x27   :  { %786 = vmatprep.subr.bf16.mxu0 %v942_v0  ;;  %798 = vmatprep.subr.bf16.mxu1 %v942_v0  ;;  %43 = vst.msk [vmem:[#allocation2] sm:$0xff] %vm42_vm0, %v943_v1  ;;  %v46_v2 = vld [vmem:[#allocation6] sm:$0xff]  ;;  %v47_v3 = vld [vmem:[#allocation6 + $0x8] sm:$0xff]  ;;  %v48_v4 = vld [vmem:[#allocation6 + $0x10] sm:$0xff]  ;;  %s945_s1 = smov [#allocation8]  }
  0x28   :  { %688 = vmatprep.mubr.msk.f32.mxu0 %vm944_vm1, %v943_v1  ;;  %707 = vmatprep.mubr.msk.f32.mxu1 %vm944_vm1, %v943_v1  ;;  %v59_v5 = vand.u32 4294901760, %v46_v2  ;;  %v62_v6 = vand.u32 4294901760, %v47_v3  ;;  %v49_v7 = vld [vmem:[#allocation6 + $0x18] sm:$0xff]  ;;  %v65_v8 = vand.u32 4294901760, %v48_v4  ;;  %v50_v9 = vld [vmem:[#allocation6 + $0x20] sm:$0xff]  ;;  %v51_v10 = vld [vmem:[#allocation6 + $0x28] sm:$0xff] }
  0x29   :  { %v68_v11 = vand.u32 4294901760, %v49_v7  ;;  %v71_v12 = vand.u32 4294901760, %v50_v9  ;;  %v74_v13 = vand.u32 4294901760, %v51_v10  ;;  %v52_v14 = vld [vmem:[#allocation6 + $0x30] sm:$0xff]  ;;  %v53_v19 = vld [vmem:[#allocation6 + $0x38] sm:$0xff]  ;;  %s608_s6 = sshll.u32 %s945_s1, 4  ;;  %s609_s6 = int_to_ptr.vmem [resolvable:$true] %s608_s6 }
  0x2a   :  { %v1000_v15 = vpack.c.bf16 %v62_v6, %v59_v5  ;;  %v1002_v16 = vsub.f32 %v46_v2, %v59_v5  ;;  %v1004_v17 = vsub.f32 %v47_v3, %v62_v6  ;;  %v1006_v18 = vsub.f32 %v48_v4, %v65_v8  ;;  %v45_v20 = vld [vmem:[#allocation3] sm:$0xff]  ;;  %s910_s7 = scalar_lea.vmem %s609_s6, 128  ;;  %p915_p3 = scmp.lt.s32.totalorder %s609_s6, %s609_s6 }
  0x2b   :  { %v1008_v21 = vpack.c.bf16 %v68_v11, %v65_v8  ;;  %v1010_v22 = vsub.f32 %v49_v7, %v68_v11  ;;  %v1012_v23 = vsub.f32 %v50_v9, %v71_v12  ;;  %v1015_v24 = vsub.f32 %v51_v10, %v74_v13  ;;  %p911_p2 = scmp.ne.s32.totalorder %s609_s6, %s910_s7  ;;  %p916_p4 = scmp.lt.s32.totalorder %s910_s7, %s910_s7 }
  0x2c   :  { %788 = vmatpush3.bf16.msra.mxu0 %v1000_v15  ;;  %v144_v25 = vand.u32 4294901760, %v1002_v16  ;;  %v151_v26 = vand.u32 4294901760, %v1004_v17  ;;  %v77_v27 = vand.u32 4294901760, %v52_v14  ;;  %v80_v28 = vand.u32 4294901760, %v53_v19 }
  0x2d   :  { %789 = vmatprep.subr.bf16.mxu0 %v942_v0  ;;  %v158_v29 = vand.u32 4294901760, %v1006_v18  ;;  %v165_v30 = vand.u32 4294901760, %v1010_v22  ;;  %v56_v31 = vsel %vm42_vm0, %v45_v20, 0  ;;  %v1033_v36 = vpack.c.bf16 %v74_v13, %v71_v12  ;;  %p917_p5 = por %p916_p4, %p915_p3 }
  0x2e   :  { %v145_v32 = vsub.f32 %v1002_v16, %v144_v25  ;;  %v152_v33 = vsub.f32 %v1004_v17, %v151_v26  ;;  %v1029_v34 = vsub.f32 %v52_v14, %v77_v27  ;;  %v1031_v35 = vand.u32 4294901760, %v56_v31 }
  0x2f   :  { %v1035_v37 = vsub.f32 %v53_v19, %v80_v28  ;;  %v159_v38 = vsub.f32 %v1006_v18, %v158_v29  ;;  %v166_v39 = vsub.f32 %v1010_v22, %v165_v30  ;;  %v172_v43 = vand.u32 4294901760, %v1012_v23  ;;  %p918_p6 = pnand %p917_p5, %p911_p2 }
  0x30   :  { %791 = vmatpush3.bf16.msra.mxu0 %v1008_v21  ;;  %v146_v40 = vand.u32 4294901760, %v145_v32  ;;  %v153_v41 = vand.u32 4294901760, %v152_v33  ;;  %v1045_v42 = vsub.f32 %v56_v31, %v1031_v35  ;;  %v179_v46 = vand.u32 4294901760, %v1015_v24 }
  0x31   :  { %792 = vmatprep.subr.bf16.mxu0 %v942_v0  ;;  %v160_v44 = vand.u32 4294901760, %v159_v38  ;;  %v167_v45 = vand.u32 4294901760, %v166_v39  ;;  %v173_v49 = vsub.f32 %v1012_v23, %v172_v43  ;;  %v186_v50 = vand.u32 4294901760, %v1029_v34 }
  0x32   :  { %v799_v47 = vpack.c.bf16 %v153_v41, %v146_v40  ;;  %v133_v48 = vand.u32 4294901760, %v1045_v42  ;;  %v1055_v51 = vpack.c.bf16 %v80_v28, %v77_v27  ;;  %v180_v52 = vsub.f32 %v1015_v24, %v179_v46 }
  0x33   :  { %v193_v53 = vand.u32 4294901760, %v1035_v37  ;;  %v802_v54 = vpack.c.bf16 %v167_v45, %v160_v44  ;;  %v174_v56 = vand.u32 4294901760, %v173_v49  ;;  %v187_v57 = vsub.f32 %v1029_v34, %v186_v50 }
  0x34   :  { %794 = vmatpush3.bf16.msra.mxu0 %v1033_v36  ;;  %800 = vmatpush3.bf16.msra.mxu1 %v799_v47  ;;  %v134_v55 = vsub.f32 %v1045_v42, %v133_v48  ;;  %v181_v58 = vand.u32 4294901760, %v180_v52  ;;  %v811_v62 = vpack.c.bf16 %v1004_v17, %v1002_v16  ;;  %v814_v4 = vpack.c.bf16 %v1010_v22, %v1006_v18 }
  0x35   :  { %795 = vmatprep.subr.bf16.mxu0 %v942_v0  ;;  %801 = vmatprep.subr.bf16.mxu1 %v942_v0  ;;  %v194_v59 = vsub.f32 %v1035_v37, %v193_v53  ;;  %v188_v63 = vand.u32 4294901760, %v187_v57  ;;  %v817_v5 = vpack.c.bf16 %v1015_v24, %v1012_v23  ;;  %v820_v6 = vpack.c.bf16 %v1035_v37, %v1029_v34  ;;  %v44_v24 = vld [vmem:[#allocation2] sm:$0xff] }
  0x36   :  { %v135_v60 = vand.u32 4294901760, %v134_v55  ;;  %v805_v61 = vpack.c.bf16 %v181_v58, %v174_v56  ;;  %v835_v7 = vpack.c.bf16 %v151_v26, %v144_v25  ;;  %v838_v8 = vpack.c.bf16 %v165_v30, %v158_v29 }
  0x37   :  { %v195_v2 = vand.u32 4294901760, %v194_v59  ;;  %v841_v9 = vpack.c.bf16 %v179_v46, %v172_v43  ;;  %v844_v10 = vpack.c.bf16 %v193_v53, %v186_v50 }
  0x38   :  { %797 = vmatpush3.bf16.msra.mxu0 %v1055_v51  ;;  %803 = vmatpush3.bf16.msra.mxu1 %v802_v54 }
  0x39   :  { %804 = vmatprep.subr.bf16.mxu1 %v942_v0  ;;  %810 = vmatprep.subr.bf16.mxu0 %v942_v0  ;;  %v808_v3 = vpack.c.bf16 %v195_v2, %v188_v63 }
  0x3b   :  { %689 = vmatmul.mubr.f32.vlgmr.msra.gmra.mrb[0].mxu0 %v135_v60 }
  0x3c   :  { %806 = vmatpush3.bf16.msra.mxu1 %v805_v61  ;;  %812 = vmatpush3.bf16.msra.mxu0 %v811_v62 }
  0x3d   :  { %807 = vmatprep.subr.bf16.mxu1 %v942_v0  ;;  %813 = vmatprep.subr.bf16.mxu0 %v942_v0 }
  0x3e   :  { %726 = vmatprep.mubr.msk.f32.mxu0 %vm944_vm1, %v943_v1 }
  0x40   :  { %809 = vmatpush3.bf16.msra.mxu1 %v808_v3  ;;  %815 = vmatpush3.bf16.msra.mxu0 %v814_v4 }
  0x41   :  { %816 = vmatprep.subr.bf16.mxu0 %v942_v0  ;;  %822 = vmatprep.subr.bf16.mxu1 %v942_v0 }
  0x43   :  { %708 = vmatmul.mubr.f32.vlgmr.msra.gmra.mrb[0].mxu1 %v1031_v35 }
  0x44   :  { %818 = vmatpush3.bf16.msra.mxu0 %v817_v5  ;;  %824 = vmatpush3.bf16.msra.mxu1 %v1000_v15 }
  0x45   :  { %819 = vmatprep.subr.bf16.mxu0 %v942_v0  ;;  %825 = vmatprep.subr.bf16.mxu1 %v942_v0 }
  0x46   :  { %745 = vmatprep.mubr.msk.f32.mxu1 %vm944_vm1, %v943_v1 }
  0x48   :  { %821 = vmatpush3.bf16.msra.mxu0 %v820_v6  ;;  %827 = vmatpush3.bf16.msra.mxu1 %v1008_v21 }
  0x49   :  { %828 = vmatprep.subr.bf16.mxu1 %v942_v0  ;;  %834 = vmatprep.subr.bf16.mxu0 %v942_v0 }
  0x4b   :  { %727 = vmatmul.mubr.f32.vlgmr.msra.gmra.mrb[2].mxu0 %v1045_v42 }
  0x4c   :  { %830 = vmatpush3.bf16.msra.mxu1 %v1033_v36  ;;  %836 = vmatpush3.bf16.msra.mxu0 %v835_v7 }
  0x4d   :  { %831 = vmatprep.subr.bf16.mxu1 %v942_v0  ;;  %837 = vmatprep.subr.bf16.mxu0 %v942_v0 }
  0x4e   :  { %764 = vmatprep.mubr.msk.f32.mxu0 %vm944_vm1, %v943_v1 }
  0x50   :  { %833 = vmatpush3.bf16.msra.mxu1 %v1055_v51  ;;  %839 = vmatpush3.bf16.msra.mxu0 %v838_v8 }
  0x51   :  { %840 = vmatprep.subr.bf16.mxu0 %v942_v0  ;;  %846 = vmatprep.subr.bf16.mxu1 %v942_v0 }
  0x53   :  { %746 = vmatmul.mubr.f32.vlgmr.msra.gmra.mrb[2].mxu1 %v133_v48 }
  0x54   :  { %842 = vmatpush3.bf16.msra.mxu0 %v841_v9  ;;  %848 = vmatpush3.bf16.msra.mxu1 %v1000_v15 }
  0x55   :  { %843 = vmatprep.subr.bf16.mxu0 %v942_v0  ;;  %849 = vmatprep.subr.bf16.mxu1 %v942_v0 }
  0x56   :  { %783 = vmatprep.mubr.msk.f32.mxu1 %vm944_vm1, %v943_v1 }
  0x58   :  { %845 = vmatpush3.bf16.msra.mxu0 %v844_v10  ;;  %851 = vmatpush3.bf16.msra.mxu1 %v1008_v21 }
  0x59   :  { %852 = vmatprep.subr.bf16.mxu1 %v942_v0 }
  0x5b   :  { %765 = vmatmul.mubr.f32.vlgmr.msra.gmra.mrb[4].mxu0 %v1031_v35 }
  0x5c   :  { %854 = vmatpush3.bf16.msra.mxu1 %v1033_v36 }
  0x5d   :  { %855 = vmatprep.subr.bf16.mxu1 %v942_v0 }
  0x60   :  { %857 = vmatpush3.bf16.msra.mxu1 %v1055_v51 }
  0x63   :  { %784 = vmatmul.mubr.f32.vlgmr.msra.gmra.mrb[4].mxu1 %v1031_v35 }
 0x10e   :  { %v137_v11 = vpop.f32.mrb[0].mxu0 }
 0x10f   :  { %v690_v12 = vpop.f32.mrb[1].mxu0 }
 0x116   :  { %v248_v13 = vpop.f32.mrb[0].mxu1 }
 0x117   :  { %v249_v14 = vadd.f32 %v248_v13, %v137_v11  ;;  %v709_v1 = vpop.f32.mrb[1].mxu1 }
 0x11e   :  { %v336_v15 = vpop.f32.mrb[2].mxu0 }
 0x11f   :  { %v337_v16 = vadd.f32 %v336_v15, %v249_v14  ;;  %v728_v17 = vpop.f32.mrb[3].mxu0 }
 0x126   :  { %v417_v18 = vpop.f32.mrb[2].mxu1 }
 0x127   :  { %v418_v19 = vadd.f32 %v417_v18, %v337_v16  ;;  %v747_v20 = vpop.f32.mrb[3].mxu1 }
 0x12e   :  { %v512_v21 = vpop.f32.mrb[4].mxu0 }
 0x12f   :  { %v513_v22 = vadd.f32 %v512_v21, %v418_v19  ;;  %v766_v23 = vpop.f32.mrb[5].mxu0 }
 0x136   :  { %v591_v0 = vpop.f32.mrb[4].mxu1 }
 0x137   :  { %v592_v25 = vadd.f32 %v591_v0, %v513_v22  ;;  %v785_v26 = vpop.f32.mrb[5].mxu1 }
 0x139   :  { %v595_v27 = vadd.f32 %v592_v25, %v44_v24 }
 0x13b   :  { %596 = vst.msk [vmem:[#allocation2] sm:$0xff] %vm42_vm0, %v595_v27 }
 0x142   :  { %v600_v28 = vld [vmem:[#allocation2] sm:$0xff] }
 0x143   :  { %601 = vst.msk [vmem:[#allocation8] sm:$0xff] %vm42_vm0, %v600_v28 }
 0x144   :  { %921 = shalt.err (!%p918_p6)
}
 0x145   :  { %s922_s10 = scalar_lea.hbm %s1142_s2, 128 }
 0x146   :  { %p923_p7 = scmp.ne.s32.totalorder %s1142_s2, %s922_s10  ;;  %p926_p8 = scmp.lt.u32.totalorder %s922_s10, %s1142_s2 }
 0x148   :  { %p928_p9 = pnand %p926_p8, %p923_p7 }
 0x14a   :  { %931 = shalt.err (!%p928_p9)
}
 0x14b   :  { %611 = dma.vmem_to_hbm [thread:$0]  %s609_s6, 128, %s1142_s2, [#allocation5]  }
 0x14c   :  { %936 = dma.done.wait [#allocation5], 128  }
 0x14d   :  { %937 = vsyncadd [#allocation5], 4294967168 }
 0x14e   :  { %615 = vsyncpa [#allocation4], 1 }
 0x14f   :  { %616 = vsyncpa [#allocation7], 1 }
 0x150   :  { %617 = vsyncpa [#allocation5], 1 }

</bundles_post_ra>
